<compile_context>
chip_gen: v5e
topology: v5e:2x2
jax: 0.10.0
libtpu: 0.0.40
codegen_flags: <defaults>
</compile_context>

<pallas_src>
import jax
import jax.numpy as jnp
from jax.experimental import pallas as pl
from jax.experimental.pallas import tpu as pltpu

NEG_SLOPE = 0.2   # LeakyReLU negative slope
IN_EPS = 1e-5     # InstanceNorm2d default eps


def _leaky_relu(x):
    return jnp.where(x >= 0, x, NEG_SLOPE * x)


# ---------------------------------------------------------------------------
# Kernel 1: ConvTranspose2d(k=2, s=2) as one matmul + InstanceNorm + LeakyReLU
# ---------------------------------------------------------------------------
def _make_upconv_kernel(L, cmid):
    def kernel(x_ref, w_ref, o_ref):
        # x_ref: (1, L, Cin) bf16 ; w_ref: (Cin, 4*cmid) bf16
        # output column index = (i*2 + j)*cmid + cout  (2x2 kernel position groups)
        y = jnp.dot(x_ref[0], w_ref[...],
                    preferred_element_type=jnp.float32)            # (L, 4*cmid) f32

        # InstanceNorm2d over the *upsampled* image: each channel c appears in
        # 4 lane groups (one per kernel position) -> reduce over L and groups.
        s1 = jnp.sum(y, axis=0, keepdims=True)                     # (1, 4*cmid)
        s2 = jnp.sum(y * y, axis=0, keepdims=True)
        s1c = (s1[:, 0:cmid] + s1[:, cmid:2 * cmid]
               + s1[:, 2 * cmid:3 * cmid] + s1[:, 3 * cmid:4 * cmid])
        s2c = (s2[:, 0:cmid] + s2[:, cmid:2 * cmid]
               + s2[:, 2 * cmid:3 * cmid] + s2[:, 3 * cmid:4 * cmid])
        n = 4.0 * L
        mean = s1c / n
        var = s2c / n - mean * mean
        inv = jax.lax.rsqrt(var + IN_EPS)
        mean4 = jnp.concatenate([mean, mean, mean, mean], axis=1)  # (1, 4*cmid)
        inv4 = jnp.concatenate([inv, inv, inv, inv], axis=1)

        yn = _leaky_relu((y - mean4) * inv4)
        o_ref[0] = yn.astype(o_ref.dtype)

    return kernel


def upconv_in_lrelu(x_tok, w_flat, cmid):
    # x_tok: (B, L, Cin) bf16 ; w_flat: (Cin, 4*cmid) bf16 -> (B, L, 4*cmid) bf16
    B, L, Cin = x_tok.shape
    return pl.pallas_call(
        _make_upconv_kernel(L, cmid),
        out_shape=jax.ShapeDtypeStruct((B, L, 4 * cmid), jnp.bfloat16),
        grid_spec=pltpu.PrefetchScalarGridSpec(
            num_scalar_prefetch=0,
            grid=(B,),
            in_specs=[
                pl.BlockSpec((1, L, Cin), lambda b: (b, 0, 0)),
                pl.BlockSpec((Cin, 4 * cmid), lambda b: (0, 0)),
            ],
            out_specs=pl.BlockSpec((1, L, 4 * cmid), lambda b: (b, 0, 0)),
        ),
        compiler_params=pltpu.CompilerParams(dimension_semantics=("parallel",)),
    )(x_tok, w_flat)


# ---------------------------------------------------------------------------
# Kernel 2: fused DoubleConv
#   conv3x3 -> IN -> LeakyReLU -> [Dropout2d] -> conv3x3 -> IN
#   (+ identity if Cin == Cout) -> LeakyReLU -> [Dropout2d]
# Each conv is a single (L, 9*C) @ (9*C, Cout) bf16 matmul; the im2col patches
# are built in-kernel from a zero-padded image block (no 9x HBM copies), and
# the conv1 output is re-padded inside a VMEM scratch (no HBM round trip).
# ---------------------------------------------------------------------------
def _make_doubleconv_kernel(H, W, Cin, Cout, residual):
    L = H * W

    def kernel(xp_ref, w1_ref, w2_ref, o_ref, y1p_ref):
        # xp_ref : (1, H+2, W+2, Cin) bf16  -- zero-padded [skip, up] concat
        # w1_ref : (9*Cin, Cout) bf16 ; w2_ref: (9*Cout, Cout) bf16
        # o_ref  : (1, L, Cout) f32
        # y1p_ref: (H+2, W+2, Cout) f32 VMEM scratch (padded conv1 output)

        # --- conv1: im2col from the padded input ref (static sliced loads) ---
        cols1 = []
        for kh in range(3):
            for kw in range(3):
                cols1.append(
                    xp_ref[0, kh:kh + H, kw:kw + W, :]
                    .reshape(L, Cin).astype(jnp.float32))
        patches1 = jnp.concatenate(cols1, axis=-1).astype(jnp.bfloat16)  # (L, 9*Cin)
        acc1 = jnp.dot(patches1, w1_ref[...],
                       preferred_element_type=jnp.float32)               # (L, Cout)

        # InstanceNorm (affine=False, biased var) + LeakyReLU
        m1 = jnp.mean(acc1, axis=0, keepdims=True)
        v1 = jnp.mean(acc1 * acc1, axis=0, keepdims=True) - m1 * m1
        y1 = _leaky_relu((acc1 - m1) * jax.lax.rsqrt(v1 + IN_EPS))
        # TODO(synk): Dropout2d is identity (eval mode).

        # --- zero-pad conv1 output spatially inside VMEM ---
        y1p_ref[...] = jnp.zeros((H + 2, W + 2, Cout), jnp.float32)
        y1p_ref[1:H + 1, 1:W + 1, :] = y1.reshape(H, W, Cout)

        # --- conv2: im2col from the VMEM scratch ---
        cols2 = []
        for kh in range(3):
            for kw in range(3):
                cols2.append(y1p_ref[kh:kh + H, kw:kw + W, :].reshape(L, Cout))
        patches2 = jnp.concatenate(cols2, axis=-1).astype(jnp.bfloat16)  # (L, 9*Cout)
        acc2 = jnp.dot(patches2, w2_ref[...],
                       preferred_element_type=jnp.float32)               # (L, Cout)

        m2 = jnp.mean(acc2, axis=0, keepdims=True)
        v2 = jnp.mean(acc2 * acc2, axis=0, keepdims=True) - m2 * m2
        out = (acc2 - m2) * jax.lax.rsqrt(v2 + IN_EPS)

        if residual:
            # identity = the (unpadded) DoubleConv input = center im2col tap.
            out = out + cols1[4]

        out = _leaky_relu(out)      # activation_dropout (Dropout2d identity)
        o_ref[0] = out.astype(o_ref.dtype)

    return kernel


def doubleconv_fused(xc_pad, w1_flat, w2_flat, Cout, residual):
    # xc_pad: (B, H+2, W+2, Cin) bf16 -> (B, L, Cout) f32
    B, Hp, Wp, Cin = xc_pad.shape
    H, W = Hp - 2, Wp - 2
    L = H * W
    return pl.pallas_call(
        _make_doubleconv_kernel(H, W, Cin, Cout, residual),
        out_shape=jax.ShapeDtypeStruct((B, L, Cout), jnp.float32),
        grid_spec=pltpu.PrefetchScalarGridSpec(
            num_scalar_prefetch=0,
            grid=(B,),
            in_specs=[
                pl.BlockSpec((1, Hp, Wp, Cin), lambda b: (b, 0, 0, 0)),
                pl.BlockSpec((9 * Cin, Cout), lambda b: (0, 0)),
                pl.BlockSpec((9 * Cout, Cout), lambda b: (0, 0)),
            ],
            out_specs=pl.BlockSpec((1, L, Cout), lambda b: (b, 0, 0)),
            scratch_shapes=[pltpu.VMEM((Hp, Wp, Cout), jnp.float32)],
        ),
        compiler_params=pltpu.CompilerParams(dimension_semantics=("parallel",)),
    )(xc_pad, w1_flat, w2_flat)


# ---------------------------------------------------------------------------
# Parameters (deterministic synthetic init; shapes match the PyTorch module,
# stored in matmul-ready layouts; all convs are bias=False in the reference).
# ---------------------------------------------------------------------------
def init_params(key, in_channels, out_channels):
    cmid = in_channels // 2
    ks = jax.random.split(key, 3)

    def nrm(k, shape, scale=0.1):
        return (scale * jax.random.normal(k, shape)).astype(jnp.float32)

    return {
        # ConvTranspose2d(Cin, Cin//2, k=2, s=2, bias=False):
        #   stored as (Cin, 2, 2, Cmid) == torch (Cin, Cmid, 2, 2).permute(0,2,3,1)
        "w_up": nrm(ks[0], (in_channels, 2, 2, cmid)),
        # Conv2d(Cin, Cout, 3, padding=1, bias=False): HWIO (3, 3, Cin, Cout)
        "w1": nrm(ks[1], (3, 3, in_channels, out_channels)),
        # Conv2d(Cout, Cout, 3, padding=1, bias=False): HWIO
        "w2": nrm(ks[2], (3, 3, out_channels, out_channels)),
    }


# ---------------------------------------------------------------------------
# Forward wrapper (layout/glue in plain JAX; all heavy math in Pallas kernels)
# ---------------------------------------------------------------------------
def decoder_block_forward(x_nchw, skip_nchw, params, in_channels, out_channels):
    B, Cin, H, W = x_nchw.shape
    assert Cin == in_channels
    cmid = in_channels // 2
    H2, W2 = 2 * H, 2 * W
    L, L2 = H * W, H2 * W2

    # ---- up_conv (k=2, s=2) + InstanceNorm + LeakyReLU -----------------------
    x_tok = jnp.transpose(x_nchw, (0, 2, 3, 1)).reshape(B, L, Cin).astype(jnp.bfloat16)
    wup = params["w_up"].reshape(Cin, 4 * cmid).astype(jnp.bfloat16)
    up = upconv_in_lrelu(x_tok, wup, cmid)                      # (B, L, 4*cmid) bf16
    # scatter the 2x2 kernel-position groups back to the upsampled image
    up_img = jnp.transpose(up.reshape(B, H, W, 2, 2, cmid),
                           (0, 1, 3, 2, 4, 5)).reshape(B, H2, W2, cmid)

    # ---- skip path: optional bilinear resize, then channel concat -----------
    skip_nhwc = jnp.transpose(skip_nchw, (0, 2, 3, 1)).astype(jnp.float32)
    if skip_nhwc.shape[1:3] != (H2, W2):
        # TODO(synk): F.interpolate(bilinear, align_corners=False) fallback is
        # XLA glue (jax.image.resize), not a Pallas kernel.
        skip_nhwc = jax.image.resize(
            skip_nhwc, (B, H2, W2, skip_nhwc.shape[-1]), method="bilinear")
    xc = jnp.concatenate([skip_nhwc.astype(jnp.bfloat16), up_img], axis=-1)
    Cdc = xc.shape[-1]
    assert Cdc == in_channels, "skip channels must complete in_channels after concat"
    xc_pad = jnp.pad(xc, ((0, 0), (1, 1), (1, 1), (0, 0)))      # (B, H2+2, W2+2, Cdc)

    # ---- fused DoubleConv ----------------------------------------------------
    w1 = params["w1"].reshape(9 * Cdc, out_channels).astype(jnp.bfloat16)
    w2 = params["w2"].reshape(9 * out_channels, out_channels).astype(jnp.bfloat16)
    residual = (Cdc == out_channels)   # DoubleConv.use_residual
    out = doubleconv_fused(xc_pad, w1, w2, out_channels, residual)   # (B, L2, Cout) f32

    out_img = out.reshape(B, H2, W2, out_channels)
    return jnp.transpose(out_img, (0, 3, 1, 2))                 # back to NCHW


if __name__ == "__main__":
    key = jax.random.PRNGKey(0)
    kx, ks, kp = jax.random.split(key, 3)

    # small shapes consistent with the module: decoder halves channels,
    # skip carries in_channels//2 channels at the upsampled resolution.
    B, Cin, Cout, H, W = 2, 32, 16, 8, 8
    x = jax.random.normal(kx, (B, Cin, H, W), dtype=jnp.float32)
    skip = jax.random.normal(ks, (B, Cin // 2, 2 * H, 2 * W), dtype=jnp.float32)
    params = init_params(kp, Cin, Cout)

    out = decoder_block_forward(x, skip, params, Cin, Cout)
    out = jax.block_until_ready(out)
    assert out.shape == (B, Cout, 2 * H, 2 * W)
    assert jnp.all(jnp.isfinite(out))
    print("KERNEL_OK")
</pallas_src>

<mosaic_0001>
module attributes {stable_mosaic.version = 11 : i64} {
  func.func @kernel(%arg0: i32, %arg1: memref<1x64x32xbf16, #tpu.memory_space<vmem>>, %arg2: memref<32x64xbf16, #tpu.memory_space<vmem>>, %arg3: memref<1x64x64xbf16, #tpu.memory_space<vmem>>) attributes {dimension_semantics = [#tpu.dimension_semantics<parallel>], iteration_bounds = array<i64: 2>, scalar_prefetch = 0 : i64, scratch_operands = 0 : i64, tpu.core_type = #tpu.core_type<tc>, window_params = [{transform_indices = @transform_0, window_bounds = array<i64: 1, 64, 32>}, {pipeline_mode = #tpu.pipeline_mode<synchronous>, transform_indices = @transform_1, window_bounds = array<i64: 32, 64>}, {transform_indices = @transform_2, window_bounds = array<i64: 1, 64, 64>}]} {
    %c0 = arith.constant 0 : index
    %c0_0 = arith.constant 0 : index
    %c0_1 = arith.constant 0 : index
    %0 = vector.load %arg1[%c0, %c0_0, %c0_1] : memref<1x64x32xbf16, #tpu.memory_space<vmem>>, vector<1x64x32xbf16>
    %1 = vector.shape_cast %0 : vector<1x64x32xbf16> to vector<64x32xbf16>
    %c0_2 = arith.constant 0 : index
    %c0_3 = arith.constant 0 : index
    %2 = vector.load %arg2[%c0_2, %c0_3] : memref<32x64xbf16, #tpu.memory_space<vmem>>, vector<32x64xbf16>
    %cst = arith.constant dense<0.000000e+00> : vector<64x64xf32>
    %3 = tpu.matmul %1, %2, %cst {dimension_numbers = #tpu.dot_dimension_numbers<[1], [0], [0], [1], [0, 0, 1, 1], [], []>} : vector<64x32xbf16>, vector<32x64xbf16>, vector<64x64xf32> -> vector<64x64xf32>
    %cst_4 = arith.constant dense<0.000000e+00> : vector<64xf32>
    %4 = vector.multi_reduction <add>, %3, %cst_4 [0] : vector<64x64xf32> to vector<64xf32>
    %5 = vector.shape_cast %4 : vector<64xf32> to vector<1x64xf32>
    %6 = arith.mulf %3, %3 : vector<64x64xf32>
    %cst_5 = arith.constant dense<0.000000e+00> : vector<64xf32>
    %7 = vector.multi_reduction <add>, %6, %cst_5 [0] : vector<64x64xf32> to vector<64xf32>
    %8 = vector.shape_cast %7 : vector<64xf32> to vector<1x64xf32>
    %9 = vector.extract_strided_slice %5 {offsets = [0, 0], sizes = [1, 16], strides = [1, 1]} : vector<1x64xf32> to vector<1x16xf32>
    %10 = vector.extract_strided_slice %5 {offsets = [0, 16], sizes = [1, 16], strides = [1, 1]} : vector<1x64xf32> to vector<1x16xf32>
    %11 = arith.addf %9, %10 : vector<1x16xf32>
    %12 = vector.extract_strided_slice %5 {offsets = [0, 32], sizes = [1, 16], strides = [1, 1]} : vector<1x64xf32> to vector<1x16xf32>
    %13 = arith.addf %11, %12 : vector<1x16xf32>
    %14 = vector.extract_strided_slice %5 {offsets = [0, 48], sizes = [1, 16], strides = [1, 1]} : vector<1x64xf32> to vector<1x16xf32>
    %15 = arith.addf %13, %14 : vector<1x16xf32>
    %16 = vector.extract_strided_slice %8 {offsets = [0, 0], sizes = [1, 16], strides = [1, 1]} : vector<1x64xf32> to vector<1x16xf32>
    %17 = vector.extract_strided_slice %8 {offsets = [0, 16], sizes = [1, 16], strides = [1, 1]} : vector<1x64xf32> to vector<1x16xf32>
    %18 = arith.addf %16, %17 : vector<1x16xf32>
    %19 = vector.extract_strided_slice %8 {offsets = [0, 32], sizes = [1, 16], strides = [1, 1]} : vector<1x64xf32> to vector<1x16xf32>
    %20 = arith.addf %18, %19 : vector<1x16xf32>
    %21 = vector.extract_strided_slice %8 {offsets = [0, 48], sizes = [1, 16], strides = [1, 1]} : vector<1x64xf32> to vector<1x16xf32>
    %22 = arith.addf %20, %21 : vector<1x16xf32>
    %cst_6 = arith.constant 2.560000e+02 : f32
    %23 = vector.broadcast %cst_6 : f32 to vector<1x16xf32>
    %24 = arith.divf %15, %23 : vector<1x16xf32>
    %cst_7 = arith.constant 2.560000e+02 : f32
    %25 = vector.broadcast %cst_7 : f32 to vector<1x16xf32>
    %26 = arith.divf %22, %25 : vector<1x16xf32>
    %27 = arith.mulf %24, %24 : vector<1x16xf32>
    %28 = arith.subf %26, %27 : vector<1x16xf32>
    %cst_8 = arith.constant 9.99999974E-6 : f32
    %29 = vector.broadcast %cst_8 : f32 to vector<1x16xf32>
    %30 = arith.addf %28, %29 : vector<1x16xf32>
    %31 = math.rsqrt %30 : vector<1x16xf32>
    %32 = tpu.concatenate %24, %24, %24, %24 in 1 : vector<1x16xf32>, vector<1x16xf32>, vector<1x16xf32>, vector<1x16xf32> -> vector<1x64xf32>
    %33 = tpu.concatenate %31, %31, %31, %31 in 1 : vector<1x16xf32>, vector<1x16xf32>, vector<1x16xf32>, vector<1x16xf32> -> vector<1x64xf32>
    %34 = vector.broadcast %32 : vector<1x64xf32> to vector<64x64xf32>
    %35 = arith.subf %3, %34 : vector<64x64xf32>
    %36 = vector.broadcast %33 : vector<1x64xf32> to vector<64x64xf32>
    %37 = arith.mulf %35, %36 : vector<64x64xf32>
    %cst_9 = arith.constant 0.000000e+00 : f32
    %38 = vector.broadcast %cst_9 : f32 to vector<64x64xf32>
    %39 = arith.cmpf oge, %37, %38 : vector<64x64xf32>
    %cst_10 = arith.constant 2.000000e-01 : f32
    %40 = vector.broadcast %cst_10 : f32 to vector<64x64xf32>
    %41 = arith.mulf %40, %37 : vector<64x64xf32>
    %42 = arith.select %39, %37, %41 : vector<64x64xi1>, vector<64x64xf32>
    %43 = arith.truncf %42 : vector<64x64xf32> to vector<64x64xbf16>
    %c0_11 = arith.constant 0 : index
    %c0_12 = arith.constant 0 : index
    %c0_13 = arith.constant 0 : index
    %44 = vector.load %arg3[%c0_11, %c0_12, %c0_13] : memref<1x64x64xbf16, #tpu.memory_space<vmem>>, vector<1x64x64xbf16>
    %45 = vector.shape_cast %44 : vector<1x64x64xbf16> to vector<64x64xbf16>
    %46 = vector.shape_cast %43 : vector<64x64xbf16> to vector<1x64x64xbf16>
    tpu.vector_store %arg3[%c0_11, %c0_12, %c0_13], %46 {strides = array<i32>} : memref<1x64x64xbf16, #tpu.memory_space<vmem>>, vector<1x64x64xbf16>,
    return
  }
  func.func @transform_0(%arg0: i32) -> (i32, i32, i32) {
    %c0_i32 = arith.constant 0 : i32
    %c0_i32_0 = arith.constant 0 : i32
    %c0_i32_1 = arith.constant 0 : i32
    return %arg0, %c0_i32, %c0_i32_0 : i32, i32, i32
  }
  func.func @transform_1(%arg0: i32) -> (i32, i32) {
    %c0_i32 = arith.constant 0 : i32
    %c0_i32_0 = arith.constant 0 : i32
    %c0_i32_1 = arith.constant 0 : i32
    return %c0_i32, %c0_i32_0 : i32, i32
  }
  func.func @transform_2(%arg0: i32) -> (i32, i32, i32) {
    %c0_i32 = arith.constant 0 : i32
    %c0_i32_0 = arith.constant 0 : i32
    %c0_i32_1 = arith.constant 0 : i32
    return %arg0, %c0_i32, %c0_i32_0 : i32, i32, i32
  }
}

</mosaic_0001>

<bundles_post_ra>
// kernel: tpu_custom_call.1
= control target key start
LH: loop header
LB: loop body
LE: loop exit
PB: predicated region body
PF: predicated region fallthrough
CT: control target
= control target key end

     0   :  { %7 = vsyncpa [#allocation3], 0  ;;  %s867_s0 = inlined_call_operand.vmem [shape: bf16[2,64,32], index: 0, kind: input, shape index: {}]   ;;  %s868_s1 = inlined_call_operand.vmem [shape: bf16[32,64], index: 1, kind: input, shape index: {}]   ;;  %s869_s2 = inlined_call_operand.hbm [shape: bf16[2,64,64], index: 2, kind: output, shape index: {}]  }
   0x1   :  { %9 = vsyncpa [#allocation3 + $0x1], 0  ;;  %s687_s9 = smov 0   ;;  %s689_s10 = smov 0  }
   0x2   :  { %s691_s11 = smov 0   ;;  %s693_s12 = smov 0  }
   0x3 LB: > { %s708_s13 = sadd.s32 4294967295, %s661_s12   ;;  %s493_s14 = sadd.s32 4294967294, %s661_s12   ;;  %s661_s12 = sphi %s693_s12, %s875_s12   ;;  %s657_s11 = sphi %s691_s11, %s874_s11   ;;  %s653_s10 = sphi %s689_s10, %s873_s10   ;;  %s649_s9 = sphi %s687_s9, %s872_s9  }
   0x4   : > { %s712_s15 = sadd.s32 1, %s661_s12   ;;  %s69_s16 = sadd.s32 1, %s657_s11 }
   0x5   : > { %s66_s17 = ssub.s32 %s661_s12, %s712_s15  ;;  %p79_p0 = scmp.ne.s32.totalorder %s657_s11, %s653_s10 }
   0x6   : > { %p67_p1 = scmp.eq.s32.totalorder %s66_s17, 0  ;;  %p80_p2 = scmp.eq.s32.totalorder %s708_s13, 1 }
   0x7   : > { %p85_p3 = scmp.ne.s32.totalorder %s653_s10, %s649_s9  ;;  %p86_p4 = scmp.eq.s32.totalorder %s493_s14, 1 }
   0x8   : > { %s723_s18 = scalar_select %p67_p1, %s657_s11, %s69_s16  }
   0x9   : > { %p725_p5 = por %p80_p2, %p79_p0  ;;  %p729_p6 = por %p86_p4, %p85_p3 }
   0xa   : > { %p496_p7 = scmp.ge.s32.totalorder %s661_s12, 1  ;;  %p115_p8 = scmp.lt.s32.totalorder %s661_s12, 3 }
   0xc   : > { %p116_p9 = pnand %p496_p7, %p115_p8 }
   0xd   : > { %p137_p10 = scmp.lt.s32.totalorder (!%p116_p9), %s708_s13, 1  ;;  %s663_s30 = smov (!%p116_p9), 112  }
   0xe   : > { %119 = sbr.rel (%p116_p9) target bundleno = 482 (0x1e2), region = 28  ;;  %s664_s3 = smov (!%p116_p9), 96  }
   0xf   : > { %s665_s4 = smov (!%p116_p9), 80   ;;  %s667_s5 = smov (!%p116_p9), 48  }
  0x10   : > { %s668_s6 = smov (!%p116_p9), 32   ;;  %s669_s7 = smov (!%p116_p9), 16  }
  0x11   : > { %s134_s8 = sand.u32 (!%p116_p9), 1, %s653_s10   ;;  %s540_s16 = sshll.u32 (!%p116_p9), %s708_s13, 5 }
  0x12   : > { %s497_s14 = sshll.u32 (!%p116_p9), %s134_s8, 5  ;;  %s427_s21 = scalar_lea.hbm (!%p116_p9), %s869_s2, %s540_s16 }
  0x13   : > { %v539_v0 = vld [vmem:[%s868_s1 + $0x8] sm:$0xff]  ;;  %v538_v1 = vld [vmem:[%s868_s1] sm:$0xff]  ;;  %s138_s25 = scalar_select %p137_p10, %s708_s13, 1  ;;  %vm187_vm0 = vcmask 261120   ;;  %vm229_vm1 = vcmask 523264   ;;  %vm338_vm6 = vcmask 130048  }
  0x14   : > { %206 = vmatpush.bf16.msra.mxu0 %v539_v0  ;;  %541 = vmatpush.bf16.msra.mxu1 %v539_v0  ;;  %vm341_vm7 = vcmask 392192   ;;  %vm406_vm8 = vcmask 519168   ;;  %s136_s22 = scalar_lea.vmem [#allocation2], %s497_s14  ;;  %s430_s24 = sshll.u32 %s427_s21, 4  ;;  %s431_s24 = int_to_ptr.hbm [resolvable:$true] %s430_s24 }
  0x15   : > { %542 = vmatpush.bf16.msra.mxu2 %v539_v0  ;;  %543 = vmatpush.bf16.msra.mxu3 %v539_v0  ;;  %s533_s26 = sshll.u32 %s138_s25, 5  ;;  %v666_v0 = vmov 256.0   ;;  %s428_s23 = sshll.u32 %s136_s22, 4  ;;  %s429_s23 = int_to_ptr.vmem [resolvable:$true] %s428_s23 }
  0x16   : > { %s141_s29 = scalar_lea.vmem %s867_s0, %s533_s26  ;;  %595 = vrcp.f32 %v666_v0  ;;  %s416_s25 = scalar_lea.sflag [#allocation3], %s134_s8 }
  0x17   : > { %v534_v2 = vld [vmem:[%s141_s29] sm:$0xff]  ;;  %v535_v3 = vld [vmem:[%s141_s29 + $0x8] sm:$0xff]  ;;  %v536_v4 = vld [vmem:[%s141_s29 + $0x10] sm:$0xff]  ;;  %s613_s26 = sshra.s32 %s431_s24, 4  ;;  %s614_s26 = int_to_ptr.hbm [resolvable:$true] %s613_s26 }
  0x18   : > { %207 = vmatpush.bf16.msra.mxu0 %v538_v1  ;;  %544 = vmatpush.bf16.msra.mxu1 %v538_v1  ;;  %v537_v5 = vld [vmem:[%s141_s29 + $0x18] sm:$0xff]  ;;  %s615_s27 = scalar_lea.hbm %s614_s26, 32  ;;  %p620_p0 = scmp.lt.s32.totalorder %s614_s26, %s869_s2 }
  0x19   : > { %545 = vmatpush.bf16.msra.mxu2 %v538_v1  ;;  %546 = vmatpush.bf16.msra.mxu3 %v538_v1  ;;  %p616_p11 = scmp.ne.s32.totalorder %s614_s26, %s615_s27 }
  0x1b   : > { %524 = vmatmul.msk.bf16.vlgmr.msra.gmra.mxu0 %vm187_vm0, %v534_v2  ;;  %525 = vmatmul.msk.bf16.vlgmr.msra.gmra.mxu1 %vm187_vm0, %v535_v3  ;;  %p617_p12 = pnand %p616_p11, %p725_p5 }
  0x1c   : > { %526 = vmatmul.msk.bf16.vlgmr.msra.gmra.mxu2 %vm187_vm0, %v536_v4  ;;  %527 = vmatmul.msk.bf16.vlgmr.msra.gmra.mxu3 %vm187_vm0, %v537_v5  ;;  %v596_v1 = vpop.eup %595 }
  0x1d   : > { %v307_v2 = vmul.f32 256.0, %v596_v1  ;;  %vm311_vm2 = vweird.f32 %v596_v1  ;;  %p618_p13 = pneg %p617_p12 }
  0x1f   : > { %v308_v5 = vsub.f32 1.0, %v307_v2 }
  0x98   : > { %v750_v6 = vpop.f32.mrf.mxu0  ;;  %v752_v7 = vpop.f32.mrf.mxu1 }
  0x99   : > { %v251_v8 = vmul.f32 %v750_v6, %v750_v6  ;;  %v230_v13 = vsel %vm229_vm1, %v750_v6, 0.0  ;;  %v253_v14 = vmul.f32 %v752_v7, %v752_v7  ;;  %v233_v19 = vsel %vm229_vm1, %v752_v7, 0.0 }
  0x9b   : > { %v259_v18 = vsel %vm229_vm1, %v251_v8, 0.0  ;;  %v262_v24 = vsel %vm229_vm1, %v253_v14, 0.0  ;;  %v309_v14 = vmul.f32 %v596_v1, %v308_v5 }
  0x9f   : > { %v756_v9 = vpop.f32.mrf.mxu2  ;;  %v758_v10 = vpop.f32.mrf.mxu3 }
  0xa0   : > { %v760_v11 = vpop.f32.mrf.mxu0  ;;  %v762_v12 = vpop.f32.mrf.mxu1  ;;  %v255_v25 = vmul.f32 %v756_v9, %v756_v9  ;;  %v237_v29 = vsel %vm229_vm1, %v756_v9, 0.0  ;;  %v257_v37 = vmul.f32 %v758_v10, %v758_v10  ;;  %v241_v41 = vsel %vm229_vm1, %v758_v10, 0.0 }
  0xa1   : > { %v231_v15 = vsel %vm229_vm1, %v760_v11, 0.0  ;;  %v252_v16 = vmul.f32 %v760_v11, %v760_v11  ;;  %v254_v21 = vmul.f32 %v762_v12, %v762_v12  ;;  %v235_v26 = vsel %vm229_vm1, %v762_v12, 0.0 }
  0xa2   : > { %v232_v17 = vadd.f32 %v231_v15, %v230_v13  ;;  %v266_v36 = vsel %vm229_vm1, %v255_v25, 0.0  ;;  %v270_v46 = vsel %vm229_vm1, %v257_v37, 0.0 }
  0xa3   : > { %v260_v20 = vsel %vm229_vm1, %v252_v16, 0.0  ;;  %v264_v30 = vsel %vm229_vm1, %v254_v21, 0.0 }
  0xa4   : > { %v261_v22 = vadd.f32 %v260_v20, %v259_v18  ;;  %v234_v23 = vadd.f32 %v233_v19, %v232_v17  ;;  %v310_v18 = vadd.f32 %v596_v1, %v309_v14 }
  0xa6   : > { %v236_v27 = vadd.f32 %v235_v26, %v234_v23  ;;  %v263_v28 = vadd.f32 %v262_v24, %v261_v22  ;;  %v312_v24 = vsel %vm311_vm2, %v596_v1, %v310_v18 }
  0xa7   : > { %v786_v31 = vpop.f32.mrf.mxu2  ;;  %v790_v35 = vpop.f32.mrf.mxu3 }
  0xa8   : > { %v265_v32 = vadd.f32 %v264_v30, %v263_v28  ;;  %v238_v33 = vadd.f32 %v237_v29, %v236_v27  ;;  %v256_v34 = vmul.f32 %v786_v31, %v786_v31  ;;  %v239_v38 = vsel %vm229_vm1, %v786_v31, 0.0 }
  0xa9   : > { %v258_v43 = vmul.f32 %v790_v35, %v790_v35  ;;  %v243_v47 = vsel %vm229_vm1, %v790_v35, 0.0 }
  0xaa   : > { %v240_v39 = vadd.f32 %v239_v38, %v238_v33  ;;  %v267_v40 = vadd.f32 %v266_v36, %v265_v32  ;;  %v268_v42 = vsel %vm229_vm1, %v256_v34, 0.0 }
  0xab   : > { %v272_v50 = vsel %vm229_vm1, %v258_v43, 0.0 }
  0xac   : > { %v269_v44 = vadd.f32 %v268_v42, %v267_v40  ;;  %v242_v45 = vadd.f32 %v241_v41, %v240_v39 }
  0xae   : > { %v244_v48 = vadd.f32 %v243_v47, %v242_v45  ;;  %v271_v49 = vadd.f32 %v270_v46, %v269_v44 }
  0xb0   : > { %v245_v51 = vrot.slane %v244_v48, 4  ;;  %v273_v52 = vadd.f32 %v272_v50, %v271_v49 }
  0xb2   : > { %v246_v53 = vadd.f32 %v245_v51, %v244_v48  ;;  %v274_v54 = vrot.slane %v273_v52, 4 }
  0xb4   : > { %v247_v55 = vrot.slane %v246_v53, 2  ;;  %v275_v56 = vadd.f32 %v274_v54, %v273_v52 }
  0xb6   : > { %v248_v57 = vadd.f32 %v247_v55, %v246_v53  ;;  %v276_v58 = vrot.slane %v275_v56, 2 }
  0xb8   : > { %v249_v59 = vrot.slane %v248_v57, 1  ;;  %v277_v60 = vadd.f32 %v276_v58, %v275_v56 }
  0xba   : > { %v250_v61 = vadd.f32 %v249_v59, %v248_v57  ;;  %v278_v62 = vrot.slane %v277_v60, 1 }
  0xbc   : > { %281 = vrot.lane.b32.xlu0 %v250_v61, %s663_s30  ;;  %v279_v63 = vadd.f32 %v278_v62, %v277_v60 }
  0xbe   : > { %298 = vrot.lane.b32.xlu2 %v279_v63, %s664_s3  ;;  %294 = vrot.lane.b32.xlu1 %v279_v63, %s663_s30  ;;  %s619_s30 = scalar_lea.hbm %s869_s2, 64 }
  0xbf   : > { %p621_p1 = scmp.lt.s32.totalorder %s619_s30, %s615_s27 }
  0xc1   : > { %p622_p2 = por %p621_p1, %p620_p0 }
  0xc3   : > { %p623_p3 = pnand %p622_p2, %p618_p13 }
  0xc4   : > { %285 = vrot.lane.b32.xlu0 %v250_v61, %s664_s3 }
  0xc6   : > { %302 = vrot.lane.b32.xlu2 %v279_v63, %s665_s4  ;;  %289 = vrot.lane.b32.xlu1 %v250_v61, %s665_s4 }
 0x118   : > { %v299_v3 = vpop.permute.xlu2 %298 }
 0x120   : > { %v303_v20 = vpop.permute.xlu2 %302 }
 0x12e   : > { %v282_v4 = vpop.permute.xlu0 %281 }
 0x12f   : > { %v284_v15 = vadd.f32 %v282_v4, %v250_v61 }
 0x130   : > { %v295_v8 = vpop.permute.xlu1 %294 }
 0x131   : > { %v297_v13 = vadd.f32 %v295_v8, %v279_v63 }
 0x133   : > { %v301_v16 = vadd.f32 %v299_v3, %v297_v13 }
 0x135   : > { %v305_v22 = vadd.f32 %v303_v20, %v301_v16 }
 0x136   : > { %v286_v17 = vpop.permute.xlu0 %285 }
 0x137   : > { %v288_v19 = vadd.f32 %v286_v17, %v284_v15  ;;  %v314_v26 = vmul.f32 %v312_v24, %v305_v22 }
 0x138   : > { %v290_v21 = vpop.permute.xlu1 %289 }
 0x139   : > { %v292_v23 = vadd.f32 %v290_v21, %v288_v19 }
 0x13b   : > { %v313_v25 = vmul.f32 %v312_v24, %v292_v23 }
 0x13d   : > { %v315_v27 = vmul.f32 %v313_v25, %v313_v25  ;;  %335 = vrot.lane.b32.xlu2 %v313_v25, %s667_s5  ;;  %332 = vrot.lane.b32.xlu1 %v313_v25, %s668_s6 }
 0x13e   : > { %329 = vrot.lane.b32.xlu0 %v313_v25, %s669_s7 }
 0x13f   : > { %v316_v28 = vsub.f32 %v314_v26, %v315_v27 }
 0x141   : > { %v317_v29 = vadd.f32 1e-05, %v316_v28 }
 0x143   : > { %597 = vrsqrt.f32 %v317_v29  ;;  %vm324_vm4 = vweird.f32 %v317_v29 }
 0x149   : > { %v598_v30 = vpop.eup %597 }
 0x14a   : > { %v319_v32 = vmul.f32 %v598_v30, %v317_v29  ;;  %vm325_vm3 = vweird.f32 %v598_v30 }
 0x14b   : > { %vm326_vm5 = vmor %vm324_vm4, %vm325_vm3 }
 0x14c   : > { %v320_v33 = vmul.f32 %v598_v30, %v319_v32 }
 0x14e   : > { %v321_v34 = vmul.f32 0.5, %v320_v33 }
 0x150   : > { %v322_v36 = vsub.f32 1.5, %v321_v34 }
 0x152   : > { %v323_v37 = vmul.f32 %v598_v30, %v322_v36 }
 0x154   : > { %v327_v38 = vsel %vm326_vm5, %v598_v30, %v323_v37 }
 0x155   : > { %350 = vrot.lane.b32.xlu2 %v327_v38, %s667_s5  ;;  %347 = vrot.lane.b32.xlu1 %v327_v38, %s668_s6 }
 0x156   : > { %344 = vrot.lane.b32.xlu0 %v327_v38, %s669_s7 }
 0x197   : > { %v336_v43 = vpop.permute.xlu2 %335 }
 0x1af   : > { %v333_v40 = vpop.permute.xlu1 %332  ;;  %v351_v49 = vpop.permute.xlu2 %350 }
 0x1b0   : > { %v330_v39 = vpop.permute.xlu0 %329 }
 0x1b1   : > { %v339_v41 = vsel %vm338_vm6, %v313_v25, %v330_v39 }
 0x1b2   : > { %v340_v42 = vsel %vm187_vm0, %v339_v41, %v333_v40 }
 0x1b3   : > { %v342_v44 = vsel %vm341_vm7, %v340_v42, %v336_v43 }
 0x1b4   : > { %v356_v45 = vperm.slane %v342_v44, 0 }
 0x1b6   : > { %v357_v51 = vsub.f32 %v750_v6, %v356_v45  ;;  %v358_v53 = vsub.f32 %v760_v11, %v356_v45  ;;  %v359_v54 = vsub.f32 %v752_v7, %v356_v45  ;;  %v360_v55 = vsub.f32 %v762_v12, %v356_v45 }
 0x1b7   : > { %v361_v57 = vsub.f32 %v756_v9, %v356_v45  ;;  %v362_v58 = vsub.f32 %v786_v31, %v356_v45  ;;  %v363_v59 = vsub.f32 %v758_v10, %v356_v45  ;;  %v364_v60 = vsub.f32 %v790_v35, %v356_v45 }
 0x1c7   : > { %v348_v46 = vpop.permute.xlu1 %347 }
 0x1c8   : > { %v345_v47 = vpop.permute.xlu0 %344 }
 0x1c9   : > { %v353_v48 = vsel %vm338_vm6, %v327_v38, %v345_v47 }
 0x1ca   : > { %v354_v50 = vsel %vm187_vm0, %v353_v48, %v348_v46 }
 0x1cb   : > { %v355_v52 = vsel %vm341_vm7, %v354_v50, %v351_v49 }
 0x1cc   : > { %v365_v56 = vperm.slane %v355_v52, 0 }
 0x1ce   : > { %v366_v61 = vmul.f32 %v365_v56, %v357_v51  ;;  %v367_v62 = vmul.f32 %v365_v56, %v358_v53  ;;  %v368_v6 = vmul.f32 %v365_v56, %v359_v54  ;;  %v369_v63 = vmul.f32 %v365_v56, %v360_v55 }
 0x1cf   : > { %v370_v11 = vmul.f32 %v365_v56, %v361_v57  ;;  %v371_v7 = vmul.f32 %v365_v56, %v362_v58  ;;  %v372_v0 = vmul.f32 %v365_v56, %v363_v59  ;;  %v373_v12 = vmul.f32 %v365_v56, %v364_v60 }
 0x1d0   : > { %vm374_vm9 = vcmp.ge.f32.partialorder %v366_v61, 0.0  ;;  %vm375_vm10 = vcmp.ge.f32.partialorder %v367_v62, 0.0  ;;  %vm376_vm11 = vcmp.ge.f32.partialorder %v368_v6, 0.0  ;;  %vm377_vm12 = vcmp.ge.f32.partialorder %v369_v63, 0.0 }
 0x1d1   : > { %vm378_vm13 = vcmp.ge.f32.partialorder %v370_v11, 0.0  ;;  %vm379_vm14 = vcmp.ge.f32.partialorder %v371_v7, 0.0  ;;  %vm380_vm15 = vcmp.ge.f32.partialorder %v372_v0, 0.0  ;;  %v382_v9 = vmul.f32 0.2, %v366_v61 }
 0x1d2   : > { %v383_v10 = vmul.f32 0.2, %v367_v62  ;;  %v384_v31 = vmul.f32 0.2, %v368_v6  ;;  %v385_v35 = vmul.f32 0.2, %v369_v63 }
 0x1d3   : > { %v386_v1 = vmul.f32 0.2, %v370_v11  ;;  %v387_v2 = vmul.f32 0.2, %v371_v7  ;;  %v388_v3 = vmul.f32 0.2, %v372_v0  ;;  %v390_v5 = vsel %vm374_vm9, %v366_v61, %v382_v9 }
 0x1d4   : > { %v389_v4 = vmul.f32 0.2, %v373_v12  ;;  %v391_v8 = vsel %vm375_vm10, %v367_v62, %v383_v10  ;;  %vm381_vm0 = vcmp.ge.f32.partialorder %v373_v12, 0.0  ;;  %v392_v13 = vsel %vm376_vm11, %v368_v6, %v384_v31 }
 0x1d5   : > { %v393_v14 = vsel %vm377_vm12, %v369_v63, %v385_v35  ;;  %v394_v15 = vsel %vm378_vm13, %v370_v11, %v386_v1  ;;  %v395_v16 = vsel %vm379_vm14, %v371_v7, %v387_v2  ;;  %v398_v17 = vpack.c.bf16 %v390_v5, %v390_v5 }
 0x1d6   : > { %v399_v18 = vpack.c.bf16 %v391_v8, %v391_v8  ;;  %v396_v19 = vsel %vm380_vm15, %v372_v0, %v388_v3  ;;  %v400_v20 = vpack.c.bf16 %v392_v13, %v392_v13  ;;  %v401_v21 = vpack.c.bf16 %v393_v14, %v393_v14 }
 0x1d7   : > { %v397_v22 = vsel %vm381_vm0, %v373_v12, %v389_v4  ;;  %v402_v23 = vpack.c.bf16 %v394_v15, %v394_v15  ;;  %407 = vst.msk [vmem:[%s136_s22] sm:$0xf] %vm406_vm8, %v398_v17  ;;  %v403_v24 = vpack.c.bf16 %v395_v16, %v395_v16  ;;  %v404_v25 = vpack.c.bf16 %v396_v19, %v396_v19 }
 0x1d8   : > { %408 = vst.msk [vmem:[%s136_s22 + $0x4] sm:$0xf] %vm406_vm8, %v399_v18  ;;  %v405_v26 = vpack.c.bf16 %v397_v22, %v397_v22 }
 0x1d9   : > { %409 = vst.msk [vmem:[%s136_s22 + $0x8] sm:$0xf] %vm406_vm8, %v400_v20 }
 0x1da   : > { %410 = vst.msk [vmem:[%s136_s22 + $0xc] sm:$0xf] %vm406_vm8, %v401_v21 }
 0x1db   : > { %411 = vst.msk [vmem:[%s136_s22 + $0x10] sm:$0xf] %vm406_vm8, %v402_v23 }
 0x1dc   : > { %412 = vst.msk [vmem:[%s136_s22 + $0x14] sm:$0xf] %vm406_vm8, %v403_v24 }
 0x1dd   : > { %413 = vst.msk [vmem:[%s136_s22 + $0x18] sm:$0xf] %vm406_vm8, %v404_v25 }
 0x1de   : > { %414 = vst.msk [vmem:[%s136_s22 + $0x1c] sm:$0xf] %vm406_vm8, %v405_v26 }
 0x1df   : > { %626 = shalt.err (!%p623_p3)
}
 0x1e0   : > { %s670_s5 = smov 64   ;;  %s671_s6 = smov 4  }
 0x1e1   : > { %547 = dma.vmem_to_hbm [thread:$0]  (%p725_p5), %s429_s23, 512, %s431_s24, %s416_s25, %s670_s5, %s670_s5, %s671_s6  }
 0x1e2 PF: > { %p553_p4 = scmp.ge.s32.totalorder %s661_s12, 2  ;;  %s445_s7 = sand.u32 1, %s649_s9  }
 0x1e3   : > { %s446_s8 = scalar_lea.sflag [#allocation3], %s445_s7 }
 0x1e4   : > { %p550_p7 = pnand %p553_p4, %p729_p6 }
 0x1e6   : > { %p551_p8 = pneg %p550_p7 }
 0x1e8   : > { %644 = dma.done.wait (%p551_p8), %s446_s8, 512  }
 0x1e9   : > { %646 = vsyncadd (%p551_p8), %s446_s8, 4294966784  ;;  %p12_p9 = scmp.ge.s32.totalorder %s712_s15, 4   ;;  %s872_s9 = smov %s653_s10 }
 0x1ea   : > { %s873_s10 = smov %s657_s11  ;;  %s874_s11 = smov %s723_s18 }
 0x1eb   : > { %s875_s12 = smov %s712_s15  ;;  %14 = sbr.rel (!%p12_p9) target bundleno = 3 (0x3), region = 63 }
 0x1f0   :  { %452 = vsyncpa [#allocation3], 1 }
 0x1f1   :  { %454 = vsyncpa [#allocation3 + $0x1], 1 }

</bundles_post_ra>
